<compile_context>
chip_gen: v7x
topology: tpu7x:2x2x1
jax: 0.10.0
libtpu: 0.0.40
codegen_flags: <defaults>
</compile_context>

<pallas_src>
import jax
import jax.numpy as jnp
from jax.experimental import pallas as pl
from jax.experimental.pallas import tpu as pltpu

_NEG_SENTINEL = -1e30   # not -inf: avoids (-inf) - (-inf) = NaN; exp underflows cleanly to 0


def _round_up(x, m):
    return (x + m - 1) // m * m


def _lane_align():
    # v6e/v7x MXU is 256x256 (feed full tiles); v5e is 128x128.
    try:
        kind = jax.devices()[0].device_kind.lower()
    except Exception:
        kind = ""
    return 256 if ("v6" in kind or "v7" in kind) else 128


def _vmem_limit_bytes():
    # Half of physical VMEM: ~64 MiB on v5e/v6e (128 MiB), ~32 MiB on v7x (64 MiB).
    try:
        return max(32 * 1024 * 1024, int(pltpu.get_tpu_info().vmem_capacity_bytes) // 2)
    except Exception:
        return 32 * 1024 * 1024


def _resident_spec(block_shape, index_map):
    # Grid-invariant blocks are DMA'd once; single-buffer them when the API supports it.
    if hasattr(pl, "Buffered"):
        try:
            return pl.BlockSpec(block_shape, index_map, pipeline_mode=pl.Buffered(1))
        except TypeError:
            pass
    return pl.BlockSpec(block_shape, index_map)


def prepare_params(weight, bias, *, param_dtype=jnp.bfloat16):
    """One-time parameter layout (call at setup time, NOT per forward pass).

    weight: (Out, In) PyTorch layout; bias: (Out,).
    Returns:
      w_p    : (In_pad, Out_pad), transposed, zero-padded, cast to param_dtype.
      bias_p : (1, Out_pad) f32; padded lanes hold -1e30 so padded logits never win the
               row max and exp() of them is exactly 0 (padded W columns are zero).
    """
    out_dim, in_dim = weight.shape
    align = _lane_align()
    in_pad = _round_up(in_dim, align)
    out_pad = _round_up(out_dim, align)
    w_p = jnp.pad(weight.T, ((0, in_pad - in_dim), (0, out_pad - out_dim))).astype(param_dtype)
    bias_p = jnp.pad(bias.astype(jnp.float32), (0, out_pad - out_dim),
                     constant_values=_NEG_SENTINEL).reshape(1, out_pad)
    return w_p, bias_p


def linear_logsoftmax_kernel(x_ref, w_ref, b_ref, o_ref):
    # x_ref: (tm, In_pad) bf16   w_ref: (In_pad, Out_pad) bf16
    # b_ref: (1, Out_pad) f32    o_ref: (tm, Out_pad)
    logits = jnp.dot(x_ref[...], w_ref[...], preferred_element_type=jnp.float32)
    logits = logits + b_ref[...]           # padded lanes -> -1e30 via the bias sentinel
    # Numerically stable log-softmax over the lane (output) dimension, all f32.
    m = jnp.max(logits, axis=-1, keepdims=True)
    shifted = logits - m
    lse = jnp.log(jnp.sum(jnp.exp(shifted), axis=-1, keepdims=True))
    o_ref[...] = (shifted - lse).astype(o_ref.dtype)


def linear_logsoftmax(x, w_p, bias_p, out_dim, *, max_tm=256, compute_dtype=jnp.bfloat16):
    """x: (B, In); w_p/bias_p from prepare_params(); out_dim = number of valid output cols."""
    B, in_dim = x.shape
    in_pad, out_pad = w_p.shape
    out_dtype = x.dtype

    # Batch tile: minimize batch padding; force >=2 tiles for moderately large B so the
    # "parallel" batch axis can actually be sharded across both v7x TensorCores.
    n_tiles = max(1, -(-B // max_tm))
    if n_tiles == 1 and B >= 64:
        n_tiles = 2
    tm = max(8, _round_up(-(-B // n_tiles), 8))
    b_pad = _round_up(B, tm)
    grid = (b_pad // tm,)

    x_p = jnp.pad(x, ((0, b_pad - B), (0, in_pad - in_dim))).astype(compute_dtype)

    in_bytes = jnp.dtype(compute_dtype).itemsize
    out_bytes = jnp.dtype(out_dtype).itemsize
    cost = pl.CostEstimate(
        flops=2 * b_pad * in_pad * out_pad + 4 * b_pad * out_pad,
        transcendentals=b_pad * out_pad + b_pad,          # exp + log
        bytes_accessed=(in_bytes * (b_pad * in_pad + in_pad * out_pad)
                        + 4 * out_pad
                        + out_bytes * b_pad * out_pad),
    )

    out_p = pl.pallas_call(
        linear_logsoftmax_kernel,
        out_shape=jax.ShapeDtypeStruct((b_pad, out_pad), out_dtype),
        grid=grid,
        in_specs=[
            pl.BlockSpec((tm, in_pad), lambda i: (i, 0)),           # x: streamed per batch tile
            _resident_spec((in_pad, out_pad), lambda i: (0, 0)),    # W: resident, single-buffered
            _resident_spec((1, out_pad), lambda i: (0, 0)),         # bias: resident
        ],
        out_specs=pl.BlockSpec((tm, out_pad), lambda i: (i, 0)),    # lane-dense output tile
        compiler_params=pltpu.CompilerParams(
            dimension_semantics=("parallel",),                      # megacore on v7x
            vmem_limit_bytes=_vmem_limit_bytes(),                   # generation-aware budget
        ),
        cost_estimate=cost,
    )(x_p, w_p, bias_p)

    return out_p[:B, :out_dim]


if __name__ == "__main__":
    key = jax.random.PRNGKey(0)
    batch, input_dim, output_dim = 8, 32, 16

    kx, kw, kb = jax.random.split(key, 3)
    x = jax.random.normal(kx, (batch, input_dim), dtype=jnp.float32)
    # Deterministic parameter init (mimics nn.Linear's uniform(-1/sqrt(in), 1/sqrt(in)))
    bound = 1.0 / (input_dim ** 0.5)
    weight = jax.random.uniform(kw, (output_dim, input_dim), jnp.float32, -bound, bound)
    bias = jax.random.uniform(kb, (output_dim,), jnp.float32, -bound, bound)

    # One-time parameter layout (transpose/pad/cast) -- hoisted out of the forward path.
    w_p, bias_p = prepare_params(weight, bias)

    out = linear_logsoftmax(x, w_p, bias_p, output_dim)
    jax.block_until_ready(out)

    ref = jax.nn.log_softmax(x @ weight.T + bias, axis=1)
    assert out.shape == (batch, output_dim)
    # bf16 MXU operands -> looser tolerance than pure-f32
    assert jnp.allclose(out, ref, atol=3e-2, rtol=3e-2), \
        f"max abs err {jnp.max(jnp.abs(out - ref))}"

    print("KERNEL_OK")
</pallas_src>

<mosaic_0001>
module attributes {stable_mosaic.version = 11 : i64} {
  func.func @linear_logsoftmax_kernel(%arg0: i32, %arg1: memref<8x128xbf16, #tpu.memory_space<vmem>>, %arg2: memref<128x128xbf16, #tpu.memory_space<vmem>>, %arg3: memref<1x128xf32, #tpu.memory_space<vmem>>, %arg4: memref<8x128xf32, #tpu.memory_space<vmem>>) attributes {dimension_semantics = [#tpu.dimension_semantics<parallel>], iteration_bounds = array<i64: 1>, scalar_prefetch = 0 : i64, scratch_operands = 0 : i64, tpu.core_type = #tpu.core_type<tc>, window_params = [{transform_indices = @transform_0, window_bounds = array<i64: 8, 128>}, {pipeline_mode = #tpu.pipeline_mode<synchronous>, transform_indices = @transform_1, window_bounds = array<i64: 128, 128>}, {pipeline_mode = #tpu.pipeline_mode<synchronous>, transform_indices = @transform_2, window_bounds = array<i64: 1, 128>}, {transform_indices = @transform_3, window_bounds = array<i64: 8, 128>}]} {
    %c0 = arith.constant 0 : index
    %c0_0 = arith.constant 0 : index
    %0 = vector.load %arg1[%c0, %c0_0] : memref<8x128xbf16, #tpu.memory_space<vmem>>, vector<8x128xbf16>
    %c0_1 = arith.constant 0 : index
    %c0_2 = arith.constant 0 : index
    %1 = vector.load %arg2[%c0_1, %c0_2] : memref<128x128xbf16, #tpu.memory_space<vmem>>, vector<128x128xbf16>
    %cst = arith.constant dense<0.000000e+00> : vector<8x128xf32>
    %2 = tpu.matmul %0, %1, %cst {dimension_numbers = #tpu.dot_dimension_numbers<[1], [0], [0], [1], [0, 0, 1, 1], [], []>} : vector<8x128xbf16>, vector<128x128xbf16>, vector<8x128xf32> -> vector<8x128xf32>
    %c0_3 = arith.constant 0 : index
    %c0_4 = arith.constant 0 : index
    %3 = vector.load %arg3[%c0_3, %c0_4] : memref<1x128xf32, #tpu.memory_space<vmem>>, vector<1x128xf32>
    %4 = vector.broadcast %3 : vector<1x128xf32> to vector<8x128xf32>
    %5 = arith.addf %2, %4 : vector<8x128xf32>
    %cst_5 = arith.constant dense<0xFF800000> : vector<8xf32>
    %6 = vector.multi_reduction <maximumf>, %5, %cst_5 [1] : vector<8x128xf32> to vector<8xf32>
    %7 = vector.shape_cast %6 : vector<8xf32> to vector<8x1xf32>
    %8 = vector.broadcast %7 : vector<8x1xf32> to vector<8x128xf32>
    %9 = arith.subf %5, %8 : vector<8x128xf32>
    %10 = math.exp %9 : vector<8x128xf32>
    %cst_6 = arith.constant dense<0.000000e+00> : vector<8xf32>
    %11 = vector.multi_reduction <add>, %10, %cst_6 [1] : vector<8x128xf32> to vector<8xf32>
    %12 = vector.shape_cast %11 : vector<8xf32> to vector<8x1xf32>
    %13 = math.log %12 : vector<8x1xf32>
    %14 = vector.broadcast %13 : vector<8x1xf32> to vector<8x128xf32>
    %15 = arith.subf %9, %14 : vector<8x128xf32>
    %c0_7 = arith.constant 0 : index
    %c0_8 = arith.constant 0 : index
    %16 = vector.load %arg4[%c0_7, %c0_8] : memref<8x128xf32, #tpu.memory_space<vmem>>, vector<8x128xf32>
    tpu.vector_store %arg4[%c0_7, %c0_8], %15 {strides = array<i32>} : memref<8x128xf32, #tpu.memory_space<vmem>>, vector<8x128xf32>,
    return
  }
  func.func @transform_0(%arg0: i32) -> (i32, i32) {
    %c0_i32 = arith.constant 0 : i32
    %c0_i32_0 = arith.constant 0 : i32
    return %arg0, %c0_i32 : i32, i32
  }
  func.func @transform_1(%arg0: i32) -> (i32, i32) {
    %c0_i32 = arith.constant 0 : i32
    %c0_i32_0 = arith.constant 0 : i32
    %c0_i32_1 = arith.constant 0 : i32
    return %c0_i32, %c0_i32_0 : i32, i32
  }
  func.func @transform_2(%arg0: i32) -> (i32, i32) {
    %c0_i32 = arith.constant 0 : i32
    %c0_i32_0 = arith.constant 0 : i32
    %c0_i32_1 = arith.constant 0 : i32
    return %c0_i32, %c0_i32_0 : i32, i32
  }
  func.func @transform_3(%arg0: i32) -> (i32, i32) {
    %c0_i32 = arith.constant 0 : i32
    %c0_i32_0 = arith.constant 0 : i32
    return %arg0, %c0_i32 : i32, i32
  }
}

</mosaic_0001>

<bundles_post_ra>
// kernel: tpu_custom_call.1
= control target key start
LH: loop header
LB: loop body
LE: loop exit
PB: predicated region body
PF: predicated region fallthrough
CT: control target
= control target key end

     0   :  { %8 = vsyncpa [#allocation3], 0  ;;  %s383_s0 = inlined_call_operand.hbm [shape: bf16[8,128], index: 0, kind: input, shape index: {}]   ;;  %s384_s1 = inlined_call_operand.hbm [shape: bf16[128,128], index: 1, kind: input, shape index: {}]   ;;  %s385_s2 = inlined_call_operand.vmem [shape: f32[1,128], index: 2, kind: input, shape index: {}]   ;;  %s386_s3 = inlined_call_operand.hbm [shape: f32[8,128], index: 3, kind: output, shape index: {}]  }
   0x1   :  { %9 = vsyncpa [#allocation6], 0 }
   0x2   :  { %10 = vsyncpa [#allocation4], 0  ;;  %s310_s12 = smov [#allocation2]   ;;  %s311_s14 = smov [#allocation5]  }
   0x3   :  { %s17_s13 = sshll.u32 %s310_s12, 4  ;;  %s26_s15 = sshll.u32 %s311_s14, 4  ;;  %s18_s13 = int_to_ptr.vmem [resolvable:$true] %s17_s13  ;;  %s337_s15 = int_to_ptr.vmem [resolvable:$true] %s26_s15 }
   0x4   :  { %s238_s18 = scalar_lea.hbm %s383_s0, 64 }
   0x5   :  { %p239_p0 = scmp.ne.s32.totalorder %s383_s0, %s238_s18  ;;  %p242_p1 = scmp.lt.u32.totalorder %s238_s18, %s383_s0 }
   0x7   :  { %p244_p2 = pnand %p242_p1, %p239_p0 }
   0x9   :  { %247 = shalt.err (!%p244_p2)
}
   0xa   :  { %s248_s23 = scalar_lea.vmem %s18_s13, 64  ;;  %p253_p4 = scmp.lt.s32.totalorder %s18_s13, %s18_s13 }
   0xb   :  { %p249_p3 = scmp.ne.s32.totalorder %s18_s13, %s248_s23  ;;  %p254_p5 = scmp.lt.s32.totalorder %s248_s23, %s248_s23 }
   0xd   :  { %p255_p6 = por %p254_p5, %p253_p4 }
   0xf   :  { %p256_p7 = pnand %p255_p6, %p249_p3 }
  0x11   :  { %259 = shalt.err (!%p256_p7)
}
  0x12   :  { %20 = dma.hbm_to_vmem [thread:$0]  %s383_s0, 64, %s18_s13, [#allocation3]  }
  0x13   :  { %s260_s28 = scalar_lea.hbm %s384_s1, 1024 }
  0x14   :  { %p261_p8 = scmp.ne.s32.totalorder %s384_s1, %s260_s28  ;;  %p264_p9 = scmp.lt.u32.totalorder %s260_s28, %s384_s1 }
  0x16   :  { %p266_p10 = pnand %p264_p9, %p261_p8 }
  0x18   :  { %269 = shalt.err (!%p266_p10)
}
  0x19   :  { %s270_s6 = scalar_lea.vmem %s337_s15, 1024  ;;  %p275_p12 = scmp.lt.s32.totalorder %s337_s15, %s337_s15 }
  0x1a   :  { %p271_p11 = scmp.ne.s32.totalorder %s337_s15, %s270_s6  ;;  %p276_p13 = scmp.lt.s32.totalorder %s270_s6, %s270_s6 }
  0x1c   :  { %p277_p0 = por %p276_p13, %p275_p12 }
  0x1e   :  { %p278_p1 = pnand %p277_p0, %p271_p11 }
  0x20   :  { %281 = shalt.err (!%p278_p1)
}
  0x21   :  { %s312_s0 = smov 64   ;;  %s313_s7 = smov 4  }
  0x22   :  { %32 = dma.hbm_to_vmem [thread:$0]  %s384_s1, 1024, %s337_s15, [#allocation6], %s312_s0, %s312_s0, %s313_s7  }
  0x23   :  { %304 = dma.done.wait [#allocation3], 64  }
  0x24   :  { %305 = vsyncadd [#allocation3], 4294967232 }
  0x25   :  { %306 = dma.done.wait [#allocation6], 1024  }
  0x26   :  { %307 = vsyncadd [#allocation6], 4294966272  ;;  %v314_v0 = vmov 0.0   ;;  %vm315_vm0 = vmmov 0   ;;  %v226_v1 = vld [vmem:[#allocation5] sm:$0xff]   ;;  %v227_v2 = vld [vmem:[#allocation5 + $0x8] sm:$0xff]  }
  0x27   :  { %199 = vmatprep.subr.bf16.mxu0 %v314_v0  ;;  %215 = vmatprep.mubr.msk.bf16.mxu0 %vm315_vm0, %v314_v0  ;;  %v228_v3 = vld [vmem:[#allocation5 + $0x10] sm:$0xff]   ;;  %v229_v4 = vld [vmem:[#allocation5 + $0x18] sm:$0xff]   ;;  %v230_v5 = vld [vmem:[#allocation5 + $0x20] sm:$0xff]   ;;  %s316_s11 = smov [#allocation7]  }
  0x28   :  { %200 = vmatpush3.bf16.msra.mxu0 %v226_v1  ;;  %v231_v6 = vld [vmem:[#allocation5 + $0x28] sm:$0xff]   ;;  %v232_v7 = vld [vmem:[#allocation5 + $0x30] sm:$0xff]   ;;  %v233_v8 = vld [vmem:[#allocation5 + $0x38] sm:$0xff]   ;;  %s171_s12 = sshll.u32 %s316_s11, 4  ;;  %s172_s12 = int_to_ptr.vmem [resolvable:$true] %s171_s12 }
  0x29   :  { %201 = vmatprep.subr.bf16.mxu0 %v314_v0  ;;  %v42_v9 = vld [vmem:[#allocation2] sm:$0xf]  ;;  %p287_p3 = scmp.lt.s32.totalorder %s172_s12, %s172_s12 }
  0x2a   :  { %v181_v10 = vld [vmem:[%s385_s2] ss:$0 sm:$0xff]  ;;  %s282_s2 = scalar_lea.vmem %s172_s12, 128 }
  0x2b   :  { %p283_p2 = scmp.ne.s32.totalorder %s172_s12, %s282_s2  ;;  %p288_p4 = scmp.lt.s32.totalorder %s282_s2, %s282_s2 }
  0x2c   :  { %202 = vmatpush3.bf16.msra.mxu0 %v227_v2 }
  0x2d   :  { %203 = vmatprep.subr.bf16.mxu0 %v314_v0  ;;  %p289_p5 = por %p288_p4, %p287_p3 }
  0x2f   :  { %p290_p6 = pnand %p289_p5, %p283_p2 }
  0x30   :  { %204 = vmatpush3.bf16.msra.mxu0 %v228_v3 }
  0x31   :  { %205 = vmatprep.subr.bf16.mxu0 %v314_v0 }
  0x34   :  { %206 = vmatpush3.bf16.msra.mxu0 %v229_v4 }
  0x35   :  { %207 = vmatprep.subr.bf16.mxu0 %v314_v0 }
  0x38   :  { %208 = vmatpush3.bf16.msra.mxu0 %v230_v5 }
  0x39   :  { %209 = vmatprep.subr.bf16.mxu0 %v314_v0 }
  0x3c   :  { %210 = vmatpush3.bf16.msra.mxu0 %v231_v6 }
  0x3d   :  { %211 = vmatprep.subr.bf16.mxu0 %v314_v0 }
  0x40   :  { %212 = vmatpush3.bf16.msra.mxu0 %v232_v7 }
  0x41   :  { %213 = vmatprep.subr.bf16.mxu0 %v314_v0 }
  0x44   :  { %214 = vmatpush3.bf16.msra.mxu0 %v233_v8 }
  0x47   :  { %216 = vmatmul.mubr.bf16.vlgmr.msra.gmra.mrb[0].mxu0 %v42_v9 }
 0x11a   :  { %v148_v11 = vpop.f32.mrb[0].mxu0 }
 0x11b   :  { %v149_v12 = vadd.f32 %v181_v10, %v148_v11  ;;  %v217_v13 = vpop.f32.mrb[1].mxu0 }
 0x11c   :  { %v151_v14 = vpop.f32.mrb[2].mxu0 }
 0x11d   :  { %154 = vmax.xlane.f32.xlu0 %v149_v12  ;;  %v218_v15 = vpop.f32.mrb[3].mxu0 }
 0x1aa   :  { %v155_v16 = vpop.xlane.xlu0 %154 }
 0x1ab   :  { %v156_v17 = vsub.f32 %v149_v12, %v155_v16 }
 0x1ad   :  { %v157_v18 = vmul.f32 1.442695, %v156_v17 }
 0x1af   :  { %234 = vpow2.f32 %v157_v18 }
 0x1b9   :  { %v235_v19 = vpop.eup %234 }
 0x1ba   :  { %159 = vadd.xlane.f32.xlu0 %v235_v19 }
 0x247   :  { %v160_v20 = vpop.xlane.xlu0 %159 }
 0x248   :  { %236 = vlog2.f32 %v160_v20 }
 0x252   :  { %v237_v21 = vpop.eup %236 }
 0x253   :  { %v162_v22 = vmul.f32 0.6931472, %v237_v21 }
 0x255   :  { %v163_v23 = vsub.f32 %v156_v17, %v162_v22 }
 0x257   :  { %164 = vst [vmem:[#allocation7] sm:$0xff] %v163_v23 }
 0x258   :  { %293 = shalt.err (!%p290_p6)
}
 0x259   :  { %s294_s15 = scalar_lea.hbm %s386_s3, 128 }
 0x25a   :  { %p295_p7 = scmp.ne.s32.totalorder %s386_s3, %s294_s15  ;;  %p298_p8 = scmp.lt.u32.totalorder %s294_s15, %s386_s3 }
 0x25c   :  { %p300_p9 = pnand %p298_p8, %p295_p7 }
 0x25e   :  { %303 = shalt.err (!%p300_p9)
}
 0x25f   :  { %174 = dma.vmem_to_hbm [thread:$0]  %s172_s12, 128, %s386_s3, [#allocation4]  }
 0x260   :  { %308 = dma.done.wait [#allocation4], 128  }
 0x261   :  { %309 = vsyncadd [#allocation4], 4294967168 }
 0x262   :  { %178 = vsyncpa [#allocation3], 1 }
 0x263   :  { %179 = vsyncpa [#allocation6], 1 }
 0x264   :  { %180 = vsyncpa [#allocation4], 1 }

</bundles_post_ra>
